<compile_context>
chip_gen: v7x
topology: tpu7x:2x2x1
jax: 0.10.0
libtpu: 0.0.40
codegen_flags: <defaults>
</compile_context>

<pallas_src>
import functools

import jax
import jax.numpy as jnp
from jax.experimental import pallas as pl
from jax.experimental.pallas import tpu as pltpu  # noqa: F401  (TPU backend)

LN_EPS = 1e-5
HIDDEN = 64                  # LayerNorm(64) is hardcoded in the torch module
LANES = 128                  # native TPU lane width
INV_HIDDEN = 1.0 / HIDDEN
NEG_INF = -1e30              # softmax pad bias (exp() underflows to exactly 0)
N_VECS = 8                   # vector rows in v_slab: b1,g1,bt1,b2,g2,bt2,b3,0


def _layer_norm(h, gamma, beta):
    """LayerNorm over the true HIDDEN features of a 128-lane-padded h.

    Pad lanes of h are exactly zero, so plain lane sums divided by the true
    feature count (64) give correct statistics; gamma/beta are zero in the pad
    region so pad lanes stay zero.  One-pass variance saves an XLU reduce.
    """
    mu = jnp.sum(h, axis=-1, keepdims=True) * INV_HIDDEN
    ms = jnp.sum(h * h, axis=-1, keepdims=True) * INV_HIDDEN
    var = jnp.maximum(ms - mu * mu, 0.0)
    return (h - mu) * jax.lax.rsqrt(var + LN_EPS) * gamma + beta


def policy_kernel(x_ref, w_ref, v_ref, o_ref):
    B, S = x_ref.shape
    L = o_ref.shape[-1]                       # 128 lanes
    s_rows = v_ref.shape[0] - N_VECS          # sublane-padded W1 row count

    x = x_ref[...].astype(jnp.float32)        # (B, S)
    v = v_ref[...]                            # f32 slab: W1 + vectors
    w1 = v[0:s_rows, :]                       # (s_rows, 128), rows >= S are 0
    b1, g1, bt1 = v[s_rows + 0:s_rows + 1], v[s_rows + 1:s_rows + 2], v[s_rows + 2:s_rows + 3]
    b2, g2, bt2 = v[s_rows + 3:s_rows + 4], v[s_rows + 4:s_rows + 5], v[s_rows + 5:s_rows + 6]
    b3 = v[s_rows + 6:s_rows + 7]

    # fc1 on the VPU in f32: K = S (= 6) is tiny, so unroll as S broadcast-FMAs
    # on full 128-lane vregs.  Two independent partial sums halve the dependent
    # VALU chain (no f32 FMA on v6e) and let the lane-broadcasts co-issue.
    p_even = jnp.broadcast_to(b1, (B, L))
    p_odd = jnp.zeros((B, L), jnp.float32)
    for k in range(S):                        # static unroll
        term = x[:, k:k + 1] * w1[k:k + 1, :]
        if k % 2 == 0:
            p_even = p_even + term
        else:
            p_odd = p_odd + term
    h1 = jnp.maximum(_layer_norm(p_even + p_odd, g1, bt1), 0.0)

    # fc2 -> LayerNorm -> ReLU.  bf16 operands, f32 accumulate on the MXU.
    w2 = w_ref[0:L, :]                        # bf16, 16-row-tile aligned slice
    h2 = jnp.dot(h1.astype(jnp.bfloat16), w2,
                 preferred_element_type=jnp.float32) + b2
    h2 = jnp.maximum(_layer_norm(h2, g2, bt2), 0.0)

    # fc3 -> softmax over features (torch dim=1).  Pad columns carry b = -1e30,
    # so exp() is exactly 0 there and the denominator is unchanged; the output
    # stays lane-dense (B, 128).  Exact divide keeps each row summing to 1.
    w3 = w_ref[L:2 * L, :]
    logits = jnp.dot(h2.astype(jnp.bfloat16), w3,
                     preferred_element_type=jnp.float32) + b3
    m = jnp.max(logits, axis=-1, keepdims=True)
    e = jnp.exp(logits - m)
    denom = jnp.sum(e, axis=-1, keepdims=True)
    o_ref[...] = (e / denom).astype(o_ref.dtype)


@functools.partial(jax.jit, static_argnames=("action_size", "slice_output"))
def policy_forward(x, w_slab, v_slab, *, action_size, slice_output=True):
    B = x.shape[0]
    lanes = v_slab.shape[1]
    full = lambda a: pl.BlockSpec(a.shape, lambda: (0,) * a.ndim)

    # Scaling note (v7x / large batch): add a batch grid axis with block
    # (TB>=512, 128), dimension_semantics=("parallel",), and weight index_maps
    # returning constant (0, 0) (the slabs stay VMEM-resident since their block
    # index never changes) to use both TensorCores.  At B=8 a single program is
    # optimal -- splitting 8 sublanes across cores only doubles launch overhead.
    probs_padded = pl.pallas_call(
        policy_kernel,
        out_shape=jax.ShapeDtypeStruct((B, lanes), jnp.float32),
        grid=(),
        in_specs=[full(x), full(w_slab), full(v_slab)],
        out_specs=pl.BlockSpec((B, lanes), lambda: (0, 0)),
    )(x, w_slab, v_slab)
    if slice_output:
        # Lane-dense (B, 128) store in the kernel; narrow slice outside.  Pass
        # slice_output=False to skip it entirely (pad lanes are exactly 0).
        return probs_padded[:, :action_size]
    return probs_padded


def pack_params(params, state_size, action_size, lanes=LANES):
    """Pack the 10 per-layer tensors into two contiguous, lane-padded slabs.

    w_slab (bf16): [W2 | W3]  -> MXU operands, 16-row-tile aligned slices.
    v_slab (f32):  [W1 | b1 g1 bt1 b2 g2 bt2 b3 0] -> VPU path, no bf16 casts.
    """
    (w1, b1, g1, bt1, w2, b2, g2, bt2, w3, b3) = params
    s_rows = ((state_size + 7) // 8) * 8       # f32 sublane-align W1's rows

    def pad2(a, rows, cols):
        return jnp.pad(a, ((0, rows - a.shape[0]), (0, cols - a.shape[1])))

    # TODO(synk): on v7x only, the MXU also accepts fp8 operands; storing W2/W3
    # in fp8 would quarter the weight DMA (needs a policy-precision check).
    w_slab = jnp.concatenate([
        pad2(w2, lanes, lanes),                # rows [0, 128)
        pad2(w3, lanes, lanes),                # rows [128, 256)
    ], axis=0).astype(jnp.bfloat16)

    b3_pad = jnp.full((1, lanes), NEG_INF, jnp.float32).at[:, :action_size].set(b3)
    v_slab = jnp.concatenate([
        pad2(w1, s_rows, lanes),               # rows [0, s_rows)
        pad2(b1, 1, lanes), pad2(g1, 1, lanes), pad2(bt1, 1, lanes),
        pad2(b2, 1, lanes), pad2(g2, 1, lanes), pad2(bt2, 1, lanes),
        b3_pad, jnp.zeros((1, lanes), jnp.float32),
    ], axis=0).astype(jnp.float32)             # (s_rows + 8, 128)
    return w_slab, v_slab


def init_params(key, state_size, action_size, hidden=HIDDEN):
    """Deterministic synthetic parameters. Noisy-net noise is folded into the
    effective weights (W_mu + W_sigma * eps), matching forward-time math."""
    ks = jax.random.split(key, 12)

    def noisy_linear(k_mu_w, k_eps_w, k_mu_b, k_eps_b, fan_in, fan_out):
        bound = 1.0 / jnp.sqrt(fan_in)
        sigma0 = 0.5 / jnp.sqrt(fan_in)
        w_mu = jax.random.uniform(k_mu_w, (fan_in, fan_out), jnp.float32, -bound, bound)
        b_mu = jax.random.uniform(k_mu_b, (1, fan_out), jnp.float32, -bound, bound)
        eps_w = jax.random.normal(k_eps_w, (fan_in, fan_out), jnp.float32)
        eps_b = jax.random.normal(k_eps_b, (1, fan_out), jnp.float32)
        return w_mu + sigma0 * eps_w, b_mu + sigma0 * eps_b

    w1, b1 = noisy_linear(ks[0], ks[1], ks[2], ks[3], state_size, hidden)
    w2, b2 = noisy_linear(ks[4], ks[5], ks[6], ks[7], hidden, hidden)
    w3, b3 = noisy_linear(ks[8], ks[9], ks[10], ks[11], hidden, action_size)

    # LayerNorm affine params (torch default init: weight=1, bias=0)
    g1 = jnp.ones((1, hidden), jnp.float32)
    bt1 = jnp.zeros((1, hidden), jnp.float32)
    g2 = jnp.ones((1, hidden), jnp.float32)
    bt2 = jnp.zeros((1, hidden), jnp.float32)
    return (w1, b1, g1, bt1, w2, b2, g2, bt2, w3, b3)


def reference_forward(x, params, matmul_dtype=jnp.float32):
    """Pure-JAX reference.  matmul_dtype=bf16 mirrors the kernel's MXU operand
    cast (fc2/fc3 only; fc1 stays f32 like the kernel's VPU path)."""
    (w1, b1, g1, bt1, w2, b2, g2, bt2, w3, b3) = params

    def ln(h, g, b):
        mu = jnp.mean(h, axis=-1, keepdims=True)
        var = jnp.mean((h - mu) ** 2, axis=-1, keepdims=True)
        return (h - mu) / jnp.sqrt(var + LN_EPS) * g + b

    def mm(a, w):
        return jnp.dot(a.astype(matmul_dtype), w.astype(matmul_dtype),
                       preferred_element_type=jnp.float32)

    h = jax.nn.relu(ln(x @ w1 + b1, g1, bt1))
    h = jax.nn.relu(ln(mm(h, w2) + b2, g2, bt2))
    return jax.nn.softmax(mm(h, w3) + b3, axis=1)


if __name__ == "__main__":
    # Acrobot-v1: state_size=6, action_size=3
    state_size, action_size, batch = 6, 3, 8

    key = jax.random.PRNGKey(0)
    k_params, k_x = jax.random.split(key)
    params = init_params(k_params, state_size, action_size)
    w_slab, v_slab = pack_params(params, state_size, action_size)
    x = jax.random.normal(k_x, (batch, state_size), jnp.float32)

    out = policy_forward(x, w_slab, v_slab, action_size=action_size)
    out = jax.block_until_ready(out)
    assert out.shape == (batch, action_size)

    # Rows sum to 1 up to f32 rounding (exact divide in the softmax; pad lanes
    # contribute exactly 0 to the denominator).
    assert jnp.allclose(jnp.sum(out, axis=1), 1.0, atol=1e-3)

    # Strict-ish check against a reference that matches the kernel's bf16 MXU
    # operands: validates slab packing / lane padding / LayerNorm / softmax.
    ref_bf16 = reference_forward(x, params, matmul_dtype=jnp.bfloat16)
    assert jnp.allclose(out, ref_bf16, atol=5e-3, rtol=5e-3)

    # Loose check against the full-f32 reference: bounds bf16 quantization.
    ref_f32 = reference_forward(x, params, matmul_dtype=jnp.float32)
    assert jnp.allclose(out, ref_f32, atol=5e-2, rtol=5e-2)

    print("KERNEL_OK")
</pallas_src>

<mosaic_0001>
module attributes {stable_mosaic.version = 11 : i64} {
  func.func @policy_kernel(%arg0: memref<8x6xf32, #tpu.memory_space<vmem>>, %arg1: memref<256x128xbf16, #tpu.memory_space<vmem>>, %arg2: memref<16x128xf32, #tpu.memory_space<vmem>>, %arg3: memref<8x128xf32, #tpu.memory_space<vmem>>) attributes {dimension_semantics = [], scalar_prefetch = 0 : i64, scratch_operands = 0 : i64, tpu.core_type = #tpu.core_type<tc>} {
    %c0 = arith.constant 0 : index
    %c0_0 = arith.constant 0 : index
    %0 = vector.load %arg0[%c0, %c0_0] : memref<8x6xf32, #tpu.memory_space<vmem>>, vector<8x6xf32>
    %c0_1 = arith.constant 0 : index
    %c0_2 = arith.constant 0 : index
    %1 = vector.load %arg2[%c0_1, %c0_2] : memref<16x128xf32, #tpu.memory_space<vmem>>, vector<16x128xf32>
    %2 = vector.extract_strided_slice %1 {offsets = [0, 0], sizes = [8, 128], strides = [1, 1]} : vector<16x128xf32> to vector<8x128xf32>
    %3 = vector.extract_strided_slice %1 {offsets = [8, 0], sizes = [1, 128], strides = [1, 1]} : vector<16x128xf32> to vector<1x128xf32>
    %4 = vector.extract_strided_slice %1 {offsets = [9, 0], sizes = [1, 128], strides = [1, 1]} : vector<16x128xf32> to vector<1x128xf32>
    %5 = vector.extract_strided_slice %1 {offsets = [10, 0], sizes = [1, 128], strides = [1, 1]} : vector<16x128xf32> to vector<1x128xf32>
    %6 = vector.extract_strided_slice %1 {offsets = [11, 0], sizes = [1, 128], strides = [1, 1]} : vector<16x128xf32> to vector<1x128xf32>
    %7 = vector.extract_strided_slice %1 {offsets = [12, 0], sizes = [1, 128], strides = [1, 1]} : vector<16x128xf32> to vector<1x128xf32>
    %8 = vector.extract_strided_slice %1 {offsets = [13, 0], sizes = [1, 128], strides = [1, 1]} : vector<16x128xf32> to vector<1x128xf32>
    %9 = vector.extract_strided_slice %1 {offsets = [14, 0], sizes = [1, 128], strides = [1, 1]} : vector<16x128xf32> to vector<1x128xf32>
    %10 = vector.shape_cast %3 : vector<1x128xf32> to vector<1x128xf32>
    %11 = vector.broadcast %10 : vector<1x128xf32> to vector<8x128xf32>
    %cst = arith.constant 0.000000e+00 : f32
    %12 = vector.broadcast %cst : f32 to vector<8x128xf32>
    %13 = vector.extract_strided_slice %0 {offsets = [0, 0], sizes = [8, 1], strides = [1, 1]} : vector<8x6xf32> to vector<8x1xf32>
    %14 = vector.extract_strided_slice %2 {offsets = [0, 0], sizes = [1, 128], strides = [1, 1]} : vector<8x128xf32> to vector<1x128xf32>
    %15 = vector.broadcast %13 : vector<8x1xf32> to vector<8x128xf32>
    %16 = vector.broadcast %14 : vector<1x128xf32> to vector<8x128xf32>
    %17 = arith.mulf %15, %16 : vector<8x128xf32>
    %18 = arith.addf %11, %17 : vector<8x128xf32>
    %19 = vector.extract_strided_slice %0 {offsets = [0, 1], sizes = [8, 1], strides = [1, 1]} : vector<8x6xf32> to vector<8x1xf32>
    %20 = vector.extract_strided_slice %2 {offsets = [1, 0], sizes = [1, 128], strides = [1, 1]} : vector<8x128xf32> to vector<1x128xf32>
    %21 = vector.broadcast %19 : vector<8x1xf32> to vector<8x128xf32>
    %22 = vector.broadcast %20 : vector<1x128xf32> to vector<8x128xf32>
    %23 = arith.mulf %21, %22 : vector<8x128xf32>
    %24 = arith.addf %12, %23 : vector<8x128xf32>
    %25 = vector.extract_strided_slice %0 {offsets = [0, 2], sizes = [8, 1], strides = [1, 1]} : vector<8x6xf32> to vector<8x1xf32>
    %26 = vector.extract_strided_slice %2 {offsets = [2, 0], sizes = [1, 128], strides = [1, 1]} : vector<8x128xf32> to vector<1x128xf32>
    %27 = vector.broadcast %25 : vector<8x1xf32> to vector<8x128xf32>
    %28 = vector.broadcast %26 : vector<1x128xf32> to vector<8x128xf32>
    %29 = arith.mulf %27, %28 : vector<8x128xf32>
    %30 = arith.addf %18, %29 : vector<8x128xf32>
    %31 = vector.extract_strided_slice %0 {offsets = [0, 3], sizes = [8, 1], strides = [1, 1]} : vector<8x6xf32> to vector<8x1xf32>
    %32 = vector.extract_strided_slice %2 {offsets = [3, 0], sizes = [1, 128], strides = [1, 1]} : vector<8x128xf32> to vector<1x128xf32>
    %33 = vector.broadcast %31 : vector<8x1xf32> to vector<8x128xf32>
    %34 = vector.broadcast %32 : vector<1x128xf32> to vector<8x128xf32>
    %35 = arith.mulf %33, %34 : vector<8x128xf32>
    %36 = arith.addf %24, %35 : vector<8x128xf32>
    %37 = vector.extract_strided_slice %0 {offsets = [0, 4], sizes = [8, 1], strides = [1, 1]} : vector<8x6xf32> to vector<8x1xf32>
    %38 = vector.extract_strided_slice %2 {offsets = [4, 0], sizes = [1, 128], strides = [1, 1]} : vector<8x128xf32> to vector<1x128xf32>
    %39 = vector.broadcast %37 : vector<8x1xf32> to vector<8x128xf32>
    %40 = vector.broadcast %38 : vector<1x128xf32> to vector<8x128xf32>
    %41 = arith.mulf %39, %40 : vector<8x128xf32>
    %42 = arith.addf %30, %41 : vector<8x128xf32>
    %43 = vector.extract_strided_slice %0 {offsets = [0, 5], sizes = [8, 1], strides = [1, 1]} : vector<8x6xf32> to vector<8x1xf32>
    %44 = vector.extract_strided_slice %2 {offsets = [5, 0], sizes = [1, 128], strides = [1, 1]} : vector<8x128xf32> to vector<1x128xf32>
    %45 = vector.broadcast %43 : vector<8x1xf32> to vector<8x128xf32>
    %46 = vector.broadcast %44 : vector<1x128xf32> to vector<8x128xf32>
    %47 = arith.mulf %45, %46 : vector<8x128xf32>
    %48 = arith.addf %36, %47 : vector<8x128xf32>
    %49 = arith.addf %42, %48 : vector<8x128xf32>
    %cst_3 = arith.constant dense<0.000000e+00> : vector<8xf32>
    %50 = vector.multi_reduction <add>, %49, %cst_3 [1] : vector<8x128xf32> to vector<8xf32>
    %51 = vector.shape_cast %50 : vector<8xf32> to vector<8x1xf32>
    %cst_4 = arith.constant 1.562500e-02 : f32
    %52 = vector.broadcast %cst_4 : f32 to vector<8x1xf32>
    %53 = arith.mulf %51, %52 : vector<8x1xf32>
    %54 = arith.mulf %49, %49 : vector<8x128xf32>
    %cst_5 = arith.constant dense<0.000000e+00> : vector<8xf32>
    %55 = vector.multi_reduction <add>, %54, %cst_5 [1] : vector<8x128xf32> to vector<8xf32>
    %56 = vector.shape_cast %55 : vector<8xf32> to vector<8x1xf32>
    %cst_6 = arith.constant 1.562500e-02 : f32
    %57 = vector.broadcast %cst_6 : f32 to vector<8x1xf32>
    %58 = arith.mulf %56, %57 : vector<8x1xf32>
    %59 = arith.mulf %53, %53 : vector<8x1xf32>
    %60 = arith.subf %58, %59 : vector<8x1xf32>
    %cst_7 = arith.constant 0.000000e+00 : f32
    %61 = vector.broadcast %cst_7 : f32 to vector<8x1xf32>
    %62 = arith.maximumf %60, %61 : vector<8x1xf32>
    %63 = vector.broadcast %53 : vector<8x1xf32> to vector<8x128xf32>
    %64 = arith.subf %49, %63 : vector<8x128xf32>
    %cst_8 = arith.constant 9.99999974E-6 : f32
    %65 = vector.broadcast %cst_8 : f32 to vector<8x1xf32>
    %66 = arith.addf %62, %65 : vector<8x1xf32>
    %67 = math.rsqrt %66 : vector<8x1xf32>
    %68 = vector.broadcast %67 : vector<8x1xf32> to vector<8x128xf32>
    %69 = arith.mulf %64, %68 : vector<8x128xf32>
    %70 = vector.broadcast %4 : vector<1x128xf32> to vector<8x128xf32>
    %71 = arith.mulf %69, %70 : vector<8x128xf32>
    %72 = vector.broadcast %5 : vector<1x128xf32> to vector<8x128xf32>
    %73 = arith.addf %71, %72 : vector<8x128xf32>
    %cst_9 = arith.constant 0.000000e+00 : f32
    %74 = vector.broadcast %cst_9 : f32 to vector<8x128xf32>
    %75 = arith.maximumf %73, %74 : vector<8x128xf32>
    %c0_10 = arith.constant 0 : index
    %c0_11 = arith.constant 0 : index
    %76 = vector.load %arg1[%c0_10, %c0_11] : memref<256x128xbf16, #tpu.memory_space<vmem>>, vector<128x128xbf16>
    %77 = arith.truncf %75 : vector<8x128xf32> to vector<8x128xbf16>
    %cst_12 = arith.constant dense<0.000000e+00> : vector<8x128xf32>
    %78 = tpu.matmul %77, %76, %cst_12 {dimension_numbers = #tpu.dot_dimension_numbers<[1], [0], [0], [1], [0, 0, 1, 1], [], []>} : vector<8x128xbf16>, vector<128x128xbf16>, vector<8x128xf32> -> vector<8x128xf32>
    %79 = vector.broadcast %6 : vector<1x128xf32> to vector<8x128xf32>
    %80 = arith.addf %78, %79 : vector<8x128xf32>
    %cst_13 = arith.constant dense<0.000000e+00> : vector<8xf32>
    %81 = vector.multi_reduction <add>, %80, %cst_13 [1] : vector<8x128xf32> to vector<8xf32>
    %82 = vector.shape_cast %81 : vector<8xf32> to vector<8x1xf32>
    %cst_14 = arith.constant 1.562500e-02 : f32
    %83 = vector.broadcast %cst_14 : f32 to vector<8x1xf32>
    %84 = arith.mulf %82, %83 : vector<8x1xf32>
    %85 = arith.mulf %80, %80 : vector<8x128xf32>
    %cst_15 = arith.constant dense<0.000000e+00> : vector<8xf32>
    %86 = vector.multi_reduction <add>, %85, %cst_15 [1] : vector<8x128xf32> to vector<8xf32>
    %87 = vector.shape_cast %86 : vector<8xf32> to vector<8x1xf32>
    %cst_16 = arith.constant 1.562500e-02 : f32
    %88 = vector.broadcast %cst_16 : f32 to vector<8x1xf32>
    %89 = arith.mulf %87, %88 : vector<8x1xf32>
    %90 = arith.mulf %84, %84 : vector<8x1xf32>
    %91 = arith.subf %89, %90 : vector<8x1xf32>
    %cst_17 = arith.constant 0.000000e+00 : f32
    %92 = vector.broadcast %cst_17 : f32 to vector<8x1xf32>
    %93 = arith.maximumf %91, %92 : vector<8x1xf32>
    %94 = vector.broadcast %84 : vector<8x1xf32> to vector<8x128xf32>
    %95 = arith.subf %80, %94 : vector<8x128xf32>
    %cst_18 = arith.constant 9.99999974E-6 : f32
    %96 = vector.broadcast %cst_18 : f32 to vector<8x1xf32>
    %97 = arith.addf %93, %96 : vector<8x1xf32>
    %98 = math.rsqrt %97 : vector<8x1xf32>
    %99 = vector.broadcast %98 : vector<8x1xf32> to vector<8x128xf32>
    %100 = arith.mulf %95, %99 : vector<8x128xf32>
    %101 = vector.broadcast %7 : vector<1x128xf32> to vector<8x128xf32>
    %102 = arith.mulf %100, %101 : vector<8x128xf32>
    %103 = vector.broadcast %8 : vector<1x128xf32> to vector<8x128xf32>
    %104 = arith.addf %102, %103 : vector<8x128xf32>
    %cst_19 = arith.constant 0.000000e+00 : f32
    %105 = vector.broadcast %cst_19 : f32 to vector<8x128xf32>
    %106 = arith.maximumf %104, %105 : vector<8x128xf32>
    %c128 = arith.constant 128 : index
    %c0_20 = arith.constant 0 : index
    %107 = vector.load %arg1[%c128, %c0_20] : memref<256x128xbf16, #tpu.memory_space<vmem>>, vector<128x128xbf16>
    %108 = arith.truncf %106 : vector<8x128xf32> to vector<8x128xbf16>
    %cst_21 = arith.constant dense<0.000000e+00> : vector<8x128xf32>
    %109 = tpu.matmul %108, %107, %cst_21 {dimension_numbers = #tpu.dot_dimension_numbers<[1], [0], [0], [1], [0, 0, 1, 1], [], []>} : vector<8x128xbf16>, vector<128x128xbf16>, vector<8x128xf32> -> vector<8x128xf32>
    %110 = vector.broadcast %9 : vector<1x128xf32> to vector<8x128xf32>
    %111 = arith.addf %109, %110 : vector<8x128xf32>
    %cst_22 = arith.constant dense<0xFF800000> : vector<8xf32>
    %112 = vector.multi_reduction <maximumf>, %111, %cst_22 [1] : vector<8x128xf32> to vector<8xf32>
    %113 = vector.shape_cast %112 : vector<8xf32> to vector<8x1xf32>
    %114 = vector.broadcast %113 : vector<8x1xf32> to vector<8x128xf32>
    %115 = arith.subf %111, %114 : vector<8x128xf32>
    %116 = math.exp %115 : vector<8x128xf32>
    %cst_23 = arith.constant dense<0.000000e+00> : vector<8xf32>
    %117 = vector.multi_reduction <add>, %116, %cst_23 [1] : vector<8x128xf32> to vector<8xf32>
    %118 = vector.shape_cast %117 : vector<8xf32> to vector<8x1xf32>
    %119 = vector.broadcast %118 : vector<8x1xf32> to vector<8x128xf32>
    %120 = arith.divf %116, %119 : vector<8x128xf32>
    %c0_24 = arith.constant 0 : index
    %c0_25 = arith.constant 0 : index
    %121 = vector.load %arg3[%c0_24, %c0_25] : memref<8x128xf32, #tpu.memory_space<vmem>>, vector<8x128xf32>
    tpu.vector_store %arg3[%c0_24, %c0_25], %120 {strides = array<i32>} : memref<8x128xf32, #tpu.memory_space<vmem>>, vector<8x128xf32>,
    return
  }
}

</mosaic_0001>

<bundles_post_ra>
// kernel: policy_forward.1
= control target key start
LH: loop header
LB: loop body
LE: loop exit
PB: predicated region body
PF: predicated region fallthrough
CT: control target
= control target key end

     0   :  { %8 = vsyncpa [#allocation3], 0  ;;  %s726_s0 = inlined_call_operand.hbm [shape: f32[8,6], index: 0, kind: input, shape index: {}]   ;;  %s727_s1 = inlined_call_operand.hbm [shape: bf16[256,128], index: 1, kind: input, shape index: {}]   ;;  %s728_s2 = inlined_call_operand.hbm [shape: f32[16,128], index: 2, kind: input, shape index: {}]   ;;  %s729_s3 = inlined_call_operand.vmem [shape: f32[8,128], index: 3, kind: output, shape index: {}]  }
   0x1   :  { %9 = vsyncpa [#allocation5], 0  ;;  %s596_s12 = smov [#allocation4]   ;;  %s526_s16 = scalar_lea.hbm %s727_s1, 2048 }
   0x2   :  { %s25_s13 = sshll.u32 %s596_s12, 4  ;;  %p527_p0 = scmp.ne.s32.totalorder %s727_s1, %s526_s16  ;;  %s26_s13 = int_to_ptr.vmem [resolvable:$true] %s25_s13 }
   0x3   :  { %p530_p1 = scmp.lt.u32.totalorder %s526_s16, %s727_s1 }
   0x5   :  { %p532_p2 = pnand %p530_p1, %p527_p0 }
   0x7   :  { %535 = shalt.err (!%p532_p2)
}
   0x8   :  { %s536_s21 = scalar_lea.vmem %s26_s13, 2048  ;;  %p541_p4 = scmp.lt.s32.totalorder %s26_s13, %s26_s13 }
   0x9   :  { %p537_p3 = scmp.ne.s32.totalorder %s26_s13, %s536_s21  ;;  %p542_p5 = scmp.lt.s32.totalorder %s536_s21, %s536_s21 }
   0xb   :  { %p543_p6 = por %p542_p5, %p541_p4 }
   0xd   :  { %p544_p7 = pnand %p543_p6, %p537_p3 }
   0xf   :  { %547 = shalt.err (!%p544_p7)
}
  0x10   :  { %s597_s22 = smov 64   ;;  %s598_s23 = smov 4  }
  0x11   :  { %31 = dma.hbm_to_vmem [thread:$0]  %s727_s1, 2048, %s26_s13, [#allocation5], %s597_s22, %s597_s22, %s598_s23  }
  0x12   :  { %s599_s26 = smov [#allocation2]   ;;  %s600_s28 = smov [#allocation6]  }
  0x13   :  { %s16_s27 = sshll.u32 %s599_s26, 4  ;;  %s37_s29 = sshll.u32 %s600_s28, 4  ;;  %s17_s27 = int_to_ptr.vmem [resolvable:$true] %s16_s27  ;;  %s38_s29 = int_to_ptr.vmem [resolvable:$true] %s37_s29 }
  0x14   :  { %s548_s5 = scalar_lea.hbm %s726_s0, 128 }
  0x15   :  { %p549_p8 = scmp.ne.s32.totalorder %s726_s0, %s548_s5  ;;  %p552_p9 = scmp.lt.u32.totalorder %s548_s5, %s726_s0 }
  0x17   :  { %p554_p10 = pnand %p552_p9, %p549_p8 }
  0x19   :  { %557 = shalt.err (!%p554_p10)
}
  0x1a   :  { %s558_s1 = scalar_lea.vmem %s17_s27, 128  ;;  %p563_p12 = scmp.lt.s32.totalorder %s17_s27, %s17_s27 }
  0x1b   :  { %p559_p11 = scmp.ne.s32.totalorder %s17_s27, %s558_s1  ;;  %p564_p13 = scmp.lt.s32.totalorder %s558_s1, %s558_s1 }
  0x1d   :  { %p565_p0 = por %p564_p13, %p563_p12 }
  0x1f   :  { %p566_p1 = pnand %p565_p0, %p559_p11 }
  0x21   :  { %569 = shalt.err (!%p566_p1)
}
  0x22   :  { %19 = dma.hbm_to_vmem [thread:$0]  %s726_s0, 128, %s17_s27, [#allocation3]  }
  0x23   :  { %s570_s14 = scalar_lea.hbm %s728_s2, 256 }
  0x24   :  { %p571_p2 = scmp.ne.s32.totalorder %s728_s2, %s570_s14  ;;  %p574_p3 = scmp.lt.u32.totalorder %s570_s14, %s728_s2 }
  0x26   :  { %p576_p4 = pnand %p574_p3, %p571_p2 }
  0x28   :  { %579 = shalt.err (!%p576_p4)
}
  0x29   :  { %s580_s19 = scalar_lea.vmem %s38_s29, 256  ;;  %p585_p6 = scmp.lt.s32.totalorder %s38_s29, %s38_s29 }
  0x2a   :  { %p581_p5 = scmp.ne.s32.totalorder %s38_s29, %s580_s19  ;;  %p586_p7 = scmp.lt.s32.totalorder %s580_s19, %s580_s19 }
  0x2c   :  { %p587_p8 = por %p586_p7, %p585_p6 }
  0x2e   :  { %p588_p9 = pnand %p587_p8, %p581_p5 }
  0x30   :  { %591 = shalt.err (!%p588_p9)
}
  0x31   :  { %s601_s0 = smov 128   ;;  %s602_s20 = smov 8  }
  0x32   :  { %43 = dma.hbm_to_vmem [thread:$0]  %s728_s2, 256, %s38_s29, [#allocation5], %s601_s0, %s601_s0, %s602_s20  }
  0x33   :  { %592 = dma.done.wait [#allocation3], 128  }
  0x34   :  { %593 = vsyncadd [#allocation3], 4294967168 }
  0x35   :  { %594 = dma.done.wait [#allocation5], 2304  }
  0x36   :  { %595 = vsyncadd [#allocation5], 4294964992  ;;  %v603_v0 = vmov 2   ;;  %v604_v1 = vmov 0   ;;  %v54_v2 = vld [vmem:[#allocation2] sm:$0xff]  ;;  %v605_v3 = vmov 3   ;;  %v57_v8 = vlaneseq }
  0x37   :  { %498 = vset.pattern.permute.xlu1 %v603_v0  ;;  %496 = vset.pattern.permute.xlu0 %v604_v1  ;;  %v606_v4 = vmov 1   ;;  %v607_v5 = vmov 4   ;;  %v608_v6 = vmov 5   ;;  %v609_v7 = vmov 0.0   ;;  %v55_v11 = vld [vmem:[#allocation6] sm:$0xff]  ;;  %v672_v12 = vld [vmem:[#allocation6 + $0x8] sm:$0xff] }
  0x38   :  { %83 = vperm.xlu1 %498, %v54_v2   ;;  %63 = vperm.xlu0 %496, %v54_v2   ;;  %v669_v9 = vshrl.u32 %v57_v8, 7  ;;  %v502_v44 = vld [vmem:[#allocation4] sm:$0xff]   ;;  %v503_v45 = vld [vmem:[#allocation4 + $0x8] sm:$0xff]   ;;  %v504_v46 = vld [vmem:[#allocation4 + $0x10] sm:$0xff]   ;;  %vm610_vm0 = vmmov 0  }
  0x39   :  { %441 = vmatprep.subr.bf16.mxu0 %v609_v7  ;;  %461 = vmatprep.subr.bf16.mxu1 %v609_v7  ;;  %v505_v47 = vld [vmem:[#allocation4 + $0x18] sm:$0xff]   ;;  %v506_v48 = vld [vmem:[#allocation4 + $0x20] sm:$0xff]   ;;  %v507_v49 = vld [vmem:[#allocation4 + $0x28] sm:$0xff]  }
  0x3a   :  { %v59_v10 = vsub.s32 0, %v669_v9  ;;  %v98_v14 = vsub.s32 3, %v669_v9  ;;  %v78_v15 = vsub.s32 1, %v669_v9  ;;  %v88_v18 = vsub.s32 2, %v669_v9  ;;  %442 = vmatpush3.bf16.msra.mxu0 %v502_v44  ;;  %457 = vmatprep.mubr.msk.bf16.mxu0 %vm610_vm0, %v609_v7  ;;  %v508_v50 = vld [vmem:[#allocation4 + $0x30] sm:$0xff]   ;;  %v509_v51 = vld [vmem:[#allocation4 + $0x38] sm:$0xff]  }
  0x3b   :  { %v108_v20 = vsub.s32 4, %v669_v9  ;;  %v118_v24 = vsub.s32 5, %v669_v9  ;;  %443 = vmatprep.subr.bf16.mxu0 %v609_v7  ;;  %477 = vmatprep.mubr.msk.bf16.mxu1 %vm610_vm0, %v609_v7 }
  0x3c   :  { %499 = vset.pattern.permute.xlu1 %v605_v3  ;;  %497 = vset.pattern.permute.xlu0 %v606_v4  ;;  %v69_v13 = vrot.slane %v55_v11, %v59_v10  ;;  %v60_v19 = vrot.slane %v672_v12, %v59_v10  ;;  %v99_v22 = vrot.slane %v55_v11, %v98_v14 }
  0x3d   :  { %93 = vperm.xlu1 %499, %v54_v2   ;;  %73 = vperm.xlu0 %497, %v54_v2   ;;  %v79_v23 = vrot.slane %v55_v11, %v78_v15  ;;  %v89_v25 = vrot.slane %v55_v11, %v88_v18  ;;  %v109_v28 = vrot.slane %v55_v11, %v108_v20 }
  0x3e   :  { %v119_v32 = vrot.slane %v55_v11, %v118_v24  ;;  %444 = vmatpush3.bf16.msra.mxu0 %v503_v45  ;;  %v140_v60 = vrot.slane %v672_v12, %v78_v15  ;;  %v145_v63 = vrot.slane %v672_v12, %v88_v18  ;;  %v512_v18 = vld [vmem:[#allocation4 + $0x50] sm:$0xff]  }
  0x3f   :  { %445 = vmatprep.subr.bf16.mxu0 %v609_v7 }
  0x41   :  { %500 = vset.pattern.permute.xlu1 %v607_v5  ;;  %501 = vset.pattern.permute.xlu0 %v608_v6  ;;  %v168_v5 = vrot.slane %v672_v12, %v98_v14  ;;  %v513_v14 = vld [vmem:[#allocation4 + $0x58] sm:$0xff]  }
  0x42   :  { %103 = vperm.xlu1 %500, %v54_v2   ;;  %113 = vperm.xlu0 %501, %v54_v2  }
  0x43   :  { %446 = vmatpush3.bf16.msra.mxu0 %v504_v46 }
  0x44   :  { %447 = vmatprep.subr.bf16.mxu0 %v609_v7 }
  0x47   :  { %448 = vmatpush3.bf16.msra.mxu0 %v505_v47 }
  0x48   :  { %449 = vmatprep.subr.bf16.mxu0 %v609_v7 }
  0x4b   :  { %450 = vmatpush3.bf16.msra.mxu0 %v506_v48 }
  0x4c   :  { %451 = vmatprep.subr.bf16.mxu0 %v609_v7 }
  0x4f   :  { %452 = vmatpush3.bf16.msra.mxu0 %v507_v49 }
  0x50   :  { %453 = vmatprep.subr.bf16.mxu0 %v609_v7 }
  0x53   :  { %454 = vmatpush3.bf16.msra.mxu0 %v508_v50 }
  0x54   :  { %455 = vmatprep.subr.bf16.mxu0 %v609_v7 }
  0x57   :  { %456 = vmatpush3.bf16.msra.mxu0 %v509_v51 }
  0xb7   :  { %v84_v16 = vpop.permute.xlu1 %83  ;;  %v64_v17 = vpop.permute.xlu0 %63 }
  0xb8   :  { %v70_v21 = vmul.f32 %v69_v13, %v64_v17  ;;  %v90_v33 = vmul.f32 %v89_v25, %v84_v16  ;;  %v510_v16 = vld [vmem:[#allocation4 + $0x40] sm:$0xff]   ;;  %v511_v17 = vld [vmem:[#allocation4 + $0x48] sm:$0xff]  }
  0xb9   :  { %462 = vmatpush3.bf16.msra.mxu1 %v510_v16 }
  0xba   :  { %v71_v29 = vadd.f32 %v70_v21, %v60_v19  ;;  %463 = vmatprep.subr.bf16.mxu1 %v609_v7  ;;  %v514_v19 = vld [vmem:[#allocation4 + $0x60] sm:$0xff]   ;;  %v515_v21 = vld [vmem:[#allocation4 + $0x68] sm:$0xff]  }
  0xbc   :  { %v94_v26 = vpop.permute.xlu1 %93  ;;  %v74_v27 = vpop.permute.xlu0 %73  ;;  %v91_v37 = vadd.f32 %v90_v33, %v71_v29  ;;  %v274_v33 = vrot.slane %v672_v12, %v108_v20 }
  0xbd   :  { %v100_v30 = vmul.f32 %v99_v22, %v94_v26  ;;  %v80_v31 = vmul.f32 %v79_v23, %v74_v27  ;;  %464 = vmatpush3.bf16.msra.mxu1 %v511_v17  ;;  %v516_v22 = vld [vmem:[#allocation4 + $0x70] sm:$0xff]   ;;  %v517_v23 = vld [vmem:[#allocation4 + $0x78] sm:$0xff]  }
  0xbe   :  { %465 = vmatprep.subr.bf16.mxu1 %v609_v7 }
  0xbf   :  { %v101_v36 = vadd.f32 %v100_v30, %v80_v31 }
  0xc1   :  { %v104_v34 = vpop.permute.xlu1 %103  ;;  %v114_v35 = vpop.permute.xlu0 %113  ;;  %466 = vmatpush3.bf16.msra.mxu1 %v512_v18 }
  0xc2   :  { %v110_v38 = vmul.f32 %v109_v28, %v104_v34  ;;  %v120_v39 = vmul.f32 %v119_v32, %v114_v35  ;;  %467 = vmatprep.subr.bf16.mxu1 %v609_v7 }
  0xc4   :  { %v111_v40 = vadd.f32 %v110_v38, %v91_v37  ;;  %v121_v41 = vadd.f32 %v120_v39, %v101_v36 }
  0xc5   :  { %468 = vmatpush3.bf16.msra.mxu1 %v513_v14 }
  0xc6   :  { %v122_v42 = vadd.f32 %v121_v41, %v111_v40  ;;  %469 = vmatprep.subr.bf16.mxu1 %v609_v7  ;;  %v301_v41 = vsub.s32 6, %v669_v9 }
  0xc8   :  { %123 = vadd.xlane.f32.xlu1 %v122_v42  ;;  %v126_v43 = vmul.f32 %v122_v42, %v122_v42 }
  0xc9   :  { %470 = vmatpush3.bf16.msra.mxu1 %v514_v19 }
  0xca   :  { %127 = vadd.xlane.f32.xlu0 %v126_v43  ;;  %471 = vmatprep.subr.bf16.mxu1 %v609_v7 }
  0xcd   :  { %472 = vmatpush3.bf16.msra.mxu1 %v515_v21 }
  0xce   :  { %473 = vmatprep.subr.bf16.mxu1 %v609_v7 }
  0xd1   :  { %474 = vmatpush3.bf16.msra.mxu1 %v516_v22 }
  0xd2   :  { %475 = vmatprep.subr.bf16.mxu1 %v609_v7  ;;  %v279_v7 = vrot.slane %v672_v12, %v118_v24 }
  0xd5   :  { %476 = vmatpush3.bf16.msra.mxu1 %v517_v23 }
 0x155   :  { %v124_v52 = vpop.xlane.xlu1 %123 }
 0x156   :  { %v125_v53 = vmul.f32 0.015625, %v124_v52 }
 0x157   :  { %v128_v54 = vpop.xlane.xlu0 %127 }
 0x158   :  { %v130_v55 = vmul.f32 %v125_v53, %v125_v53  ;;  %v129_v56 = vmul.f32 0.015625, %v128_v54  ;;  %v133_v61 = vsub.f32 %v122_v42, %v125_v53  ;;  %v302_v42 = vrot.slane %v672_v12, %v301_v41 }
 0x15a   :  { %v131_v57 = vsub.f32 %v129_v56, %v130_v55 }
 0x15c   :  { %v132_v58 = vmax.f32 %v131_v57, 0.0 }
 0x15e   :  { %v134_v59 = vadd.f32 1e-05, %v132_v58 }
 0x160   :  { %518 = vrsqrt.f32 %v134_v59 }
 0x16a   :  { %v519_v62 = vpop.eup %518 }
 0x16b   :  { %v136_v0 = vmul.f32 %v519_v62, %v133_v61 }
 0x16d   :  { %v141_v1 = vmul.f32 %v140_v60, %v136_v0 }
 0x16f   :  { %v146_v2 = vadd.f32 %v145_v63, %v141_v1 }
 0x171   :  { %v147_v3 = vmax.f32 %v146_v2, 0.0 }
 0x173   :  { %v164_v4 = vpack.c.bf16 %v147_v3, %v147_v3 }
 0x175   :  { %458 = vmatmul.mubr.bf16.vlgmr.msra.gmra.mrb[0].mxu0 %v164_v4 }
 0x248   :  { %v251_v6 = vpop.f32.mrb[0].mxu0 }
 0x249   :  { %v252_v8 = vadd.f32 %v251_v6, %v168_v5  ;;  %v459_v10 = vpop.f32.mrb[1].mxu0 }
 0x24a   :  { %v254_v11 = vpop.f32.mrb[2].mxu0 }
 0x24b   :  { %257 = vadd.xlane.f32.xlu1 %v252_v8  ;;  %v460_v13 = vpop.f32.mrb[3].mxu0  ;;  %v260_v15 = vmul.f32 %v252_v8, %v252_v8 }
 0x24d   :  { %261 = vadd.xlane.f32.xlu0 %v260_v15 }
 0x2d8   :  { %v258_v25 = vpop.xlane.xlu1 %257 }
 0x2d9   :  { %v259_v26 = vmul.f32 0.015625, %v258_v25 }
 0x2da   :  { %v262_v27 = vpop.xlane.xlu0 %261 }
 0x2db   :  { %v264_v28 = vmul.f32 %v259_v26, %v259_v26  ;;  %v263_v29 = vmul.f32 0.015625, %v262_v27  ;;  %v267_v34 = vsub.f32 %v252_v8, %v259_v26 }
 0x2dd   :  { %v265_v30 = vsub.f32 %v263_v29, %v264_v28 }
 0x2df   :  { %v266_v31 = vmax.f32 %v265_v30, 0.0 }
 0x2e1   :  { %v268_v32 = vadd.f32 1e-05, %v266_v31 }
 0x2e3   :  { %520 = vrsqrt.f32 %v268_v32 }
 0x2ed   :  { %v521_v35 = vpop.eup %520 }
 0x2ee   :  { %v270_v36 = vmul.f32 %v521_v35, %v267_v34 }
 0x2f0   :  { %v275_v37 = vmul.f32 %v274_v33, %v270_v36 }
 0x2f2   :  { %v280_v38 = vadd.f32 %v279_v7, %v275_v37 }
 0x2f4   :  { %v281_v39 = vmax.f32 %v280_v38, 0.0 }
 0x2f6   :  { %v298_v40 = vpack.c.bf16 %v281_v39, %v281_v39 }
 0x2f8   :  { %478 = vmatmul.mubr.bf16.vlgmr.msra.gmra.mrb[0].mxu1 %v298_v40 }
 0x3cb   :  { %v385_v43 = vpop.f32.mrb[0].mxu1 }
 0x3cc   :  { %v386_v44 = vadd.f32 %v385_v43, %v302_v42  ;;  %v479_v45 = vpop.f32.mrb[1].mxu1 }
 0x3cd   :  { %v388_v20 = vpop.f32.mrb[2].mxu1 }
 0x3ce   :  { %391 = vmax.xlane.f32.xlu1 %v386_v44  ;;  %v480_v46 = vpop.f32.mrb[3].mxu1 }
 0x45b   :  { %v392_v47 = vpop.xlane.xlu1 %391 }
 0x45c   :  { %v393_v48 = vsub.f32 %v386_v44, %v392_v47 }
 0x45e   :  { %v394_v49 = vmul.f32 1.442695, %v393_v48 }
 0x460   :  { %522 = vpow2.f32 %v394_v49 }
 0x46a   :  { %v523_v24 = vpop.eup %522 }
 0x46b   :  { %396 = vadd.xlane.f32.xlu0 %v523_v24 }
 0x4f8   :  { %v397_v50 = vpop.xlane.xlu0 %396 }
 0x4f9   :  { %524 = vrcp.f32 %v397_v50 }
 0x503   :  { %v525_v51 = vpop.eup %524 }
 0x504   :  { %v399_v52 = vmul.f32 %v525_v51, %v523_v24 }
 0x506   :  { %400 = vst [vmem:[%s729_s3] sm:$0xff] %v399_v52 }
 0x507   :  { %405 = vsyncpa [#allocation3], 1 }
 0x508   :  { %406 = vsyncpa [#allocation5], 1 }

</bundles_post_ra>
